<compile_context>
chip_gen: v7x
topology: tpu7x:2x2x1
jax: 0.10.0
libtpu: 0.0.40
codegen_flags: <defaults>
</compile_context>

<pallas_src>
import functools
import math

import jax
import jax.numpy as jnp
from jax import lax
from jax.experimental import pallas as pl
from jax.experimental.pallas import tpu as pltpu

_NEG_INF = -1e30  # padded-class bias -> exp() == 0 in the in-kernel softmaxes


# ----------------------------------------------------------------------------
# Pallas kernel: one full ABINet branch (whole batch) per grid step.
# Grid = (2,): step 0 = teacher, step 1 = student.
# ----------------------------------------------------------------------------
def _fused_branch_kernel(
    patches_ref,   # (1, B*T, P)     bf16  patchified image tokens
    pos_ref,       # (1, L, C)       bf16  learned position queries
    wpatch_ref,    # (1, P, C)       bf16  patch-embedding "backbone"
    wsq_ref,       # (1, 4C, C)      bf16  [w_k*scale ; w_v ; w_l1 ; w_l2] (row-stacked)
    wemb_ref,      # (1, NCpad, C)   bf16  language token embedding (padded rows = 0)
    wgate_ref,     # (1, 2C, C)      bf16  fused alignment gate [lang-part ; vision-part]
    wcls_ref,      # (1, 3C, NCpad)  bf16  [cls_a ; cls_l ; cls_v] (row-stacked, lane-padded)
    bias_ref,      # (1, 4, NCpad)   f32   [b_a ; b_l ; b_v ; b_gate] (padded cols = -1e30)
    out_ref,       # (1, 3, B*L, NCpad) f32 packed [alignment ; language ; vision] logits
    *, B, T, P, C, L, NCpad,
):
    f32 = jnp.float32
    bf16 = jnp.bfloat16

    # ---- vision backbone: patch embedding ----------------------------------
    x = patches_ref[0]                                                    # (B*T, P)
    feat = jnp.dot(x, wpatch_ref[0], preferred_element_type=f32).astype(bf16)

    wsq = wsq_ref[0]
    w_k = wsq[0 * C:1 * C, :]     # attention scale 1/sqrt(C) folded in at setup
    w_v = wsq[1 * C:2 * C, :]
    w_l1 = wsq[2 * C:3 * C, :]
    w_l2 = wsq[3 * C:4 * C, :]

    # ---- position attention (queries = learned positions) ------------------
    k = jnp.dot(feat, w_k, preferred_element_type=f32).astype(bf16).reshape(B, T, C)
    v = jnp.dot(feat, w_v, preferred_element_type=f32).astype(bf16).reshape(B, T, C)
    q = jnp.broadcast_to(pos_ref[0][None], (B, L, C))                     # (B, L, C)
    scores = jnp.einsum("blc,btc->blt", q, k, preferred_element_type=f32)  # (B, L, T)
    scores = scores - jnp.max(scores, axis=-1, keepdims=True)
    p = jnp.exp(scores)
    attn = p * pl.reciprocal(jnp.sum(p, axis=-1, keepdims=True), approx=True)
    attn_vecs = jnp.einsum("blt,btc->blc", attn.astype(bf16), v,
                           preferred_element_type=f32).reshape(B * L, C)   # vision feature (f32)
    av = attn_vecs.astype(bf16)

    wcls = wcls_ref[0]
    cls_a = wcls[0 * C:1 * C, :]
    cls_l = wcls[1 * C:2 * C, :]
    cls_v = wcls[2 * C:3 * C, :]
    bias = bias_ref[0]
    b_a = bias[0:1, :]
    b_l = bias[1:2, :]
    b_v = bias[2:3, :]
    b_gate = bias[3:4, :C]

    logits_v = jnp.dot(av, cls_v, preferred_element_type=f32) + b_v       # (B*L, NCpad)

    # ---- language model (BCN-style refiner on softmaxed tokens) ------------
    # Padded classes carry a -1e30 bias -> exp() == 0, so the softmax matches
    # the unpadded NC-class softmax exactly.
    lvs = logits_v - jnp.max(logits_v, axis=-1, keepdims=True)
    pv = jnp.exp(lvs)
    tokens = pv * pl.reciprocal(jnp.sum(pv, axis=-1, keepdims=True), approx=True)
    emb = jnp.dot(tokens.astype(bf16), wemb_ref[0], preferred_element_type=f32).astype(bf16)
    h1 = jnp.maximum(jnp.dot(emb, w_l1, preferred_element_type=f32), 0.0).astype(bf16)
    h = jnp.dot(h1, w_l2, preferred_element_type=f32)                     # language feature (f32)
    hb = h.astype(bf16)
    logits_l = jnp.dot(hb, cls_l, preferred_element_type=f32) + b_l

    # ---- alignment: gated fusion (single fused 2C-deep gate matmul) --------
    hv = jnp.concatenate([hb, av], axis=-1)                               # (B*L, 2C)
    g_pre = jnp.dot(hv, wgate_ref[0], preferred_element_type=f32) + b_gate
    gate = pl.reciprocal(1.0 + jnp.exp(-g_pre), approx=True)
    fused = gate * attn_vecs + (1.0 - gate) * h
    logits_a = jnp.dot(fused.astype(bf16), cls_a, preferred_element_type=f32) + b_a

    out_ref[0, 0] = logits_a
    out_ref[0, 1] = logits_l
    out_ref[0, 2] = logits_v


# ----------------------------------------------------------------------------
# Parameter packing (per-branch): 16 small arrays -> 7 lane-friendly slabs.
# ----------------------------------------------------------------------------
def _pack_params(p, *, num_cls, nc_pad):
    f32, bf16 = jnp.float32, jnp.bfloat16
    C = p["w_patch"].shape[1]
    NC = num_cls
    pad_c = nc_pad - NC

    w_k = p["w_k"] * (1.0 / math.sqrt(C))               # fold attention scale
    wsq = jnp.concatenate([w_k, p["w_v"], p["w_l1"], p["w_l2"]], axis=0)      # (4C, C)

    pad_cls = lambda w: jnp.pad(w, ((0, 0), (0, pad_c)))
    wcls = jnp.concatenate(
        [pad_cls(p["cls_a"]), pad_cls(p["cls_l"]), pad_cls(p["cls_v"])], axis=0)  # (3C, NCpad)

    pad_b = lambda b: jnp.pad(b, ((0, 0), (0, pad_c)), constant_values=_NEG_INF)
    b_gate = jnp.pad(p["b_gate"], ((0, 0), (0, nc_pad - C)))
    bias = jnp.concatenate(
        [pad_b(p["b_a"]), pad_b(p["b_l"]), pad_b(p["b_v"]), b_gate], axis=0)      # (4, NCpad)

    wemb = jnp.pad(p["w_emb"], ((0, pad_c), (0, 0)))                              # (NCpad, C)

    return {
        "pos": p["pos_emb"].astype(bf16),
        "wpatch": p["w_patch"].astype(bf16),
        "wsq": wsq.astype(bf16),
        "wemb": wemb.astype(bf16),
        "wgate": p["w_gate"].reshape(2 * C, C).astype(bf16),
        "wcls": wcls.astype(bf16),
        "bias": bias.astype(f32),
    }


# ----------------------------------------------------------------------------
# TeacherStudentFusionEMA forward: both branches in one pallas_call.
# ----------------------------------------------------------------------------
def teacher_student_fusion_forward(student_params, teacher_params, images, *,
                                   loss_weight=1.0, patch=4, max_len=8, num_cls=37):
    """images: (B, 2, Cin, H, W) — view 0 -> teacher (no grad), view 1 -> student."""
    B, n_views, Cin, H, W = images.shape
    assert n_views == 2
    ph = pw = patch
    T = (H // ph) * (W // pw)
    P = ph * pw * Cin
    C = student_params["w_patch"].shape[1]
    L, NC = max_len, num_cls
    NCpad = ((NC + 127) // 128) * 128           # lane-dense class dim
    BL = B * L

    # ---- layout plumbing: patchify both views (teacher=view0, student=view1)
    xv = jnp.moveaxis(images, 1, 0)                               # (2, B, Cin, H, W)
    xv = jnp.transpose(xv, (0, 1, 3, 4, 2))                       # NHWC
    xv = xv.reshape(2, B, H // ph, ph, W // pw, pw, Cin)
    xv = jnp.transpose(xv, (0, 1, 2, 4, 3, 5, 6)).reshape(2, B * T, P)
    xv = xv.astype(jnp.bfloat16)

    # ---- pack & stack teacher(model 0) / student(model 1) parameters.
    packed = jax.tree_util.tree_map(
        lambda a, b: jnp.stack([a, b], axis=0),
        _pack_params(teacher_params, num_cls=NC, nc_pad=NCpad),
        _pack_params(student_params, num_cls=NC, nc_pad=NCpad))

    kern = functools.partial(_fused_branch_kernel,
                             B=B, T=T, P=P, C=C, L=L, NCpad=NCpad)

    def spec(*shape):
        return pl.BlockSpec((1,) + shape, lambda m: (m,) + (0,) * len(shape))

    out_packed = pl.pallas_call(
        kern,
        out_shape=jax.ShapeDtypeStruct((2, 3, BL, NCpad), jnp.float32),
        grid_spec=pltpu.PrefetchScalarGridSpec(
            num_scalar_prefetch=0,
            grid=(2,),                        # teacher / student; whole batch per step
            in_specs=[
                spec(B * T, P),               # patches
                spec(L, C),                   # pos
                spec(P, C),                   # wpatch
                spec(4 * C, C),               # wsq
                spec(NCpad, C),               # wemb
                spec(2 * C, C),               # wgate
                spec(3 * C, NCpad),           # wcls
                spec(4, NCpad),               # bias
            ],
            out_specs=spec(3, BL, NCpad),
        ),
        compiler_params=pltpu.CompilerParams(
            dimension_semantics=("parallel",)),   # 2 programs split over v7x's 2 TCs
    )(
        xv, packed["pos"], packed["wpatch"], packed["wsq"], packed["wemb"],
        packed["wgate"], packed["wcls"], packed["bias"],
    )

    logits = out_packed[:, :, :, :NC].reshape(2, 3, B, L, NC)     # drop lane padding

    def get_lengths(lg):
        # ABINet `_get_length`: first null-token (index 0) position + 1, else L.
        pred = jnp.argmax(lg, axis=-1)                            # (B, L)
        is_null = pred == 0
        has_null = jnp.any(is_null, axis=1)
        first = jnp.argmax(is_null, axis=1) + 1
        return jnp.where(has_null, first, L).astype(jnp.int32)

    names = ("alignment", "language", "vision")

    def branch_outputs(lg3, no_grad):
        outs = []
        for i, name in enumerate(names):
            lg = lax.stop_gradient(lg3[i]) if no_grad else lg3[i]
            outs.append({"logits": lg, "pt_lengths": get_lengths(lg),
                         "loss_weight": 1.0, "name": name})
        return outs

    # TODO(synk): real ABINetIterModel iterates language+alignment `iter_size`
    # times and returns the per-iteration lists; one iteration is modeled here.
    return {
        "teacher_outputs": branch_outputs(logits[0], no_grad=True),
        "student_outputs": branch_outputs(logits[1], no_grad=False),
        "loss_weight": loss_weight,
        "name": "teacher_student_fusion",
    }


# ----------------------------------------------------------------------------
# Parameter init (compact ABINet stand-in) + EMA update.
# ----------------------------------------------------------------------------
def init_abinet_params(key, *, patch=4, cin=3, hidden=64, max_len=8, num_cls=37):
    P = patch * patch * cin
    C, L, NC = hidden, max_len, num_cls
    ks = jax.random.split(key, 11)
    w = lambda k, shape: 0.05 * jax.random.normal(k, shape, jnp.float32)
    return {
        "w_patch": w(ks[0], (P, C)),
        "pos_emb": w(ks[1], (L, C)),
        "w_k": w(ks[2], (C, C)),
        "w_v": w(ks[3], (C, C)),
        "cls_v": w(ks[4], (C, NC)), "b_v": jnp.zeros((1, NC), jnp.float32),
        "w_emb": w(ks[5], (NC, C)),
        "w_l1": w(ks[6], (C, C)),
        "w_l2": w(ks[7], (C, C)),
        "cls_l": w(ks[8], (C, NC)), "b_l": jnp.zeros((1, NC), jnp.float32),
        "w_gate": w(ks[9], (2, C, C)), "b_gate": jnp.zeros((1, C), jnp.float32),
        "cls_a": w(ks[10], (C, NC)), "b_a": jnp.zeros((1, NC), jnp.float32),
    }


def update_teacher(teacher_params, student_params, decay=0.9999):
    # EMA update (matches `update_teacher`), plain JAX — not a forward-path op.
    return jax.tree_util.tree_map(
        lambda t, s: decay * t + (1.0 - decay) * lax.stop_gradient(s),
        teacher_params, student_params)


if __name__ == "__main__":
    B, CIN, H, W = 2, 3, 32, 32
    PATCH, HIDDEN, MAX_LEN, NUM_CLS = 4, 64, 8, 37

    key = jax.random.PRNGKey(0)
    k_img, k_param = jax.random.split(key)

    # (B, 2, Cin, H, W): two augmented views per sample, PyTorch NCHW layout.
    images = jax.random.normal(k_img, (B, 2, CIN, H, W), jnp.float32)

    student_params = init_abinet_params(
        k_param, patch=PATCH, cin=CIN, hidden=HIDDEN,
        max_len=MAX_LEN, num_cls=NUM_CLS)
    # teacher.load_state_dict(student.state_dict()) -> identical copy.
    teacher_params = jax.tree_util.tree_map(lambda p: p + 0.0, student_params)

    out = teacher_student_fusion_forward(
        student_params, teacher_params, images,
        loss_weight=1.0, patch=PATCH, max_len=MAX_LEN, num_cls=NUM_CLS)

    jax.block_until_ready(out["student_outputs"][0]["logits"])
    jax.block_until_ready(out["teacher_outputs"][0]["logits"])

    a_s = out["student_outputs"][0]["logits"]
    assert a_s.shape == (B, MAX_LEN, NUM_CLS), a_s.shape
    # teacher and student params are identical, but they see different views,
    # so outputs generally differ — sanity-check finiteness of both branches.
    assert bool(jnp.all(jnp.isfinite(a_s)))
    assert bool(jnp.all(jnp.isfinite(out["teacher_outputs"][2]["logits"])))

    print("KERNEL_OK")
</pallas_src>

<mosaic_0001>
module attributes {stable_mosaic.version = 11 : i64} {
  func.func @_fused_branch_kernel(%arg0: i32, %arg1: memref<1x128x48xbf16, #tpu.memory_space<vmem>>, %arg2: memref<1x8x64xbf16, #tpu.memory_space<vmem>>, %arg3: memref<1x48x64xbf16, #tpu.memory_space<vmem>>, %arg4: memref<1x256x64xbf16, #tpu.memory_space<vmem>>, %arg5: memref<1x128x64xbf16, #tpu.memory_space<vmem>>, %arg6: memref<1x128x64xbf16, #tpu.memory_space<vmem>>, %arg7: memref<1x192x128xbf16, #tpu.memory_space<vmem>>, %arg8: memref<1x4x128xf32, #tpu.memory_space<vmem>>, %arg9: memref<1x3x16x128xf32, #tpu.memory_space<vmem>>) attributes {dimension_semantics = [#tpu.dimension_semantics<parallel>], iteration_bounds = array<i64: 2>, scalar_prefetch = 0 : i64, scratch_operands = 0 : i64, tpu.core_type = #tpu.core_type<tc>, window_params = [{transform_indices = @transform_0, window_bounds = array<i64: 1, 128, 48>}, {transform_indices = @transform_1, window_bounds = array<i64: 1, 8, 64>}, {transform_indices = @transform_2, window_bounds = array<i64: 1, 48, 64>}, {transform_indices = @transform_3, window_bounds = array<i64: 1, 256, 64>}, {transform_indices = @transform_4, window_bounds = array<i64: 1, 128, 64>}, {transform_indices = @transform_5, window_bounds = array<i64: 1, 128, 64>}, {transform_indices = @transform_6, window_bounds = array<i64: 1, 192, 128>}, {transform_indices = @transform_7, window_bounds = array<i64: 1, 4, 128>}, {transform_indices = @transform_8, window_bounds = array<i64: 1, 3, 16, 128>}]} {
    %c0 = arith.constant 0 : index
    %c0_0 = arith.constant 0 : index
    %c0_1 = arith.constant 0 : index
    %0 = vector.load %arg1[%c0, %c0_0, %c0_1] : memref<1x128x48xbf16, #tpu.memory_space<vmem>>, vector<1x128x48xbf16>
    %1 = vector.shape_cast %0 : vector<1x128x48xbf16> to vector<128x48xbf16>
    %c0_2 = arith.constant 0 : index
    %c0_3 = arith.constant 0 : index
    %c0_4 = arith.constant 0 : index
    %2 = vector.load %arg3[%c0_2, %c0_3, %c0_4] : memref<1x48x64xbf16, #tpu.memory_space<vmem>>, vector<1x48x64xbf16>
    %3 = vector.shape_cast %2 : vector<1x48x64xbf16> to vector<48x64xbf16>
    %cst = arith.constant dense<0.000000e+00> : vector<128x64xf32>
    %4 = tpu.matmul %1, %3, %cst {dimension_numbers = #tpu.dot_dimension_numbers<[1], [0], [0], [1], [0, 0, 1, 1], [], []>} : vector<128x48xbf16>, vector<48x64xbf16>, vector<128x64xf32> -> vector<128x64xf32>
    %5 = arith.truncf %4 : vector<128x64xf32> to vector<128x64xbf16>
    %c0_5 = arith.constant 0 : index
    %c0_6 = arith.constant 0 : index
    %c0_7 = arith.constant 0 : index
    %6 = vector.load %arg4[%c0_5, %c0_6, %c0_7] : memref<1x256x64xbf16, #tpu.memory_space<vmem>>, vector<1x256x64xbf16>
    %7 = vector.shape_cast %6 : vector<1x256x64xbf16> to vector<256x64xbf16>
    %8 = vector.extract_strided_slice %7 {offsets = [0, 0], sizes = [64, 64], strides = [1, 1]} : vector<256x64xbf16> to vector<64x64xbf16>
    %9 = vector.extract_strided_slice %7 {offsets = [64, 0], sizes = [64, 64], strides = [1, 1]} : vector<256x64xbf16> to vector<64x64xbf16>
    %10 = vector.extract_strided_slice %7 {offsets = [128, 0], sizes = [64, 64], strides = [1, 1]} : vector<256x64xbf16> to vector<64x64xbf16>
    %11 = vector.extract_strided_slice %7 {offsets = [192, 0], sizes = [64, 64], strides = [1, 1]} : vector<256x64xbf16> to vector<64x64xbf16>
    %cst_8 = arith.constant dense<0.000000e+00> : vector<128x64xf32>
    %12 = tpu.matmul %5, %8, %cst_8 {dimension_numbers = #tpu.dot_dimension_numbers<[1], [0], [0], [1], [0, 0, 1, 1], [], []>} : vector<128x64xbf16>, vector<64x64xbf16>, vector<128x64xf32> -> vector<128x64xf32>
    %13 = arith.truncf %12 : vector<128x64xf32> to vector<128x64xbf16>
    %14 = vector.shape_cast %13 : vector<128x64xbf16> to vector<2x64x64xbf16>
    %cst_9 = arith.constant dense<0.000000e+00> : vector<128x64xf32>
    %15 = tpu.matmul %5, %9, %cst_9 {dimension_numbers = #tpu.dot_dimension_numbers<[1], [0], [0], [1], [0, 0, 1, 1], [], []>} : vector<128x64xbf16>, vector<64x64xbf16>, vector<128x64xf32> -> vector<128x64xf32>
    %16 = arith.truncf %15 : vector<128x64xf32> to vector<128x64xbf16>
    %17 = vector.shape_cast %16 : vector<128x64xbf16> to vector<2x64x64xbf16>
    %c0_10 = arith.constant 0 : index
    %c0_11 = arith.constant 0 : index
    %c0_12 = arith.constant 0 : index
    %18 = vector.load %arg2[%c0_10, %c0_11, %c0_12] : memref<1x8x64xbf16, #tpu.memory_space<vmem>>, vector<1x8x64xbf16>
    %19 = vector.shape_cast %18 : vector<1x8x64xbf16> to vector<8x64xbf16>
    %20 = vector.shape_cast %19 : vector<8x64xbf16> to vector<1x8x64xbf16>
    %21 = vector.shape_cast %20 : vector<1x8x64xbf16> to vector<1x8x64xbf16>
    %22 = vector.broadcast %21 : vector<1x8x64xbf16> to vector<2x8x64xbf16>
    "tpu.trace_start"() <{level = 10 : i32, message = "blc,btc->blt"}> : () -> ()
    %cst_13 = arith.constant dense<0.000000e+00> : vector<2x8x64xf32>
    %23 = tpu.matmul %22, %14, %cst_13 {dimension_numbers = #tpu.dot_dimension_numbers<[2], [2], [1], [1], [0, 0, 0, 1, 1, 1], [0], [0]>} : vector<2x8x64xbf16>, vector<2x64x64xbf16>, vector<2x8x64xf32> -> vector<2x8x64xf32>
    "tpu.trace_stop"() : () -> ()
    %cst_14 = arith.constant dense<0xFF800000> : vector<2x8xf32>
    %24 = vector.multi_reduction <maximumf>, %23, %cst_14 [2] : vector<2x8x64xf32> to vector<2x8xf32>
    %25 = vector.shape_cast %24 : vector<2x8xf32> to vector<2x8x1xf32>
    %26 = vector.broadcast %25 : vector<2x8x1xf32> to vector<2x8x64xf32>
    %27 = arith.subf %23, %26 : vector<2x8x64xf32>
    %28 = math.exp %27 : vector<2x8x64xf32>
    %cst_15 = arith.constant dense<0.000000e+00> : vector<2x8xf32>
    %29 = vector.multi_reduction <add>, %28, %cst_15 [2] : vector<2x8x64xf32> to vector<2x8xf32>
    %30 = vector.shape_cast %29 : vector<2x8xf32> to vector<2x8x1xf32>
    %31 = tpu.reciprocal %30 {approx = true} : vector<2x8x1xf32> -> vector<2x8x1xf32>
    %32 = vector.broadcast %31 : vector<2x8x1xf32> to vector<2x8x64xf32>
    %33 = arith.mulf %28, %32 : vector<2x8x64xf32>
    %34 = arith.truncf %33 : vector<2x8x64xf32> to vector<2x8x64xbf16>
    "tpu.trace_start"() <{level = 10 : i32, message = "blt,btc->blc"}> : () -> ()
    %cst_16 = arith.constant dense<0.000000e+00> : vector<2x8x64xf32>
    %35 = tpu.matmul %34, %17, %cst_16 {dimension_numbers = #tpu.dot_dimension_numbers<[2], [1], [1], [2], [0, 0, 0, 1, 1, 2], [0], [0]>} : vector<2x8x64xbf16>, vector<2x64x64xbf16>, vector<2x8x64xf32> -> vector<2x8x64xf32>
    "tpu.trace_stop"() : () -> ()
    %36 = vector.shape_cast %35 : vector<2x8x64xf32> to vector<16x64xf32>
    %37 = arith.truncf %36 : vector<16x64xf32> to vector<16x64xbf16>
    %c0_17 = arith.constant 0 : index
    %c0_18 = arith.constant 0 : index
    %c0_19 = arith.constant 0 : index
    %38 = vector.load %arg7[%c0_17, %c0_18, %c0_19] : memref<1x192x128xbf16, #tpu.memory_space<vmem>>, vector<1x192x128xbf16>
    %39 = vector.shape_cast %38 : vector<1x192x128xbf16> to vector<192x128xbf16>
    %40 = vector.extract_strided_slice %39 {offsets = [0, 0], sizes = [64, 128], strides = [1, 1]} : vector<192x128xbf16> to vector<64x128xbf16>
    %41 = vector.extract_strided_slice %39 {offsets = [64, 0], sizes = [64, 128], strides = [1, 1]} : vector<192x128xbf16> to vector<64x128xbf16>
    %42 = vector.extract_strided_slice %39 {offsets = [128, 0], sizes = [64, 128], strides = [1, 1]} : vector<192x128xbf16> to vector<64x128xbf16>
    %c0_20 = arith.constant 0 : index
    %c0_21 = arith.constant 0 : index
    %c0_22 = arith.constant 0 : index
    %43 = vector.load %arg8[%c0_20, %c0_21, %c0_22] : memref<1x4x128xf32, #tpu.memory_space<vmem>>, vector<1x4x128xf32>
    %44 = vector.shape_cast %43 : vector<1x4x128xf32> to vector<4x128xf32>
    %45 = vector.extract_strided_slice %44 {offsets = [0, 0], sizes = [1, 128], strides = [1, 1]} : vector<4x128xf32> to vector<1x128xf32>
    %46 = vector.extract_strided_slice %44 {offsets = [1, 0], sizes = [1, 128], strides = [1, 1]} : vector<4x128xf32> to vector<1x128xf32>
    %47 = vector.extract_strided_slice %44 {offsets = [2, 0], sizes = [1, 128], strides = [1, 1]} : vector<4x128xf32> to vector<1x128xf32>
    %48 = vector.extract_strided_slice %44 {offsets = [3, 0], sizes = [1, 64], strides = [1, 1]} : vector<4x128xf32> to vector<1x64xf32>
    %cst_23 = arith.constant dense<0.000000e+00> : vector<16x128xf32>
    %49 = tpu.matmul %37, %42, %cst_23 {dimension_numbers = #tpu.dot_dimension_numbers<[1], [0], [0], [1], [0, 0, 1, 1], [], []>} : vector<16x64xbf16>, vector<64x128xbf16>, vector<16x128xf32> -> vector<16x128xf32>
    %50 = vector.broadcast %47 : vector<1x128xf32> to vector<16x128xf32>
    %51 = arith.addf %49, %50 : vector<16x128xf32>
    %cst_24 = arith.constant dense<0xFF800000> : vector<16xf32>
    %52 = vector.multi_reduction <maximumf>, %51, %cst_24 [1] : vector<16x128xf32> to vector<16xf32>
    %53 = vector.shape_cast %52 : vector<16xf32> to vector<16x1xf32>
    %54 = vector.broadcast %53 : vector<16x1xf32> to vector<16x128xf32>
    %55 = arith.subf %51, %54 : vector<16x128xf32>
    %56 = math.exp %55 : vector<16x128xf32>
    %cst_25 = arith.constant dense<0.000000e+00> : vector<16xf32>
    %57 = vector.multi_reduction <add>, %56, %cst_25 [1] : vector<16x128xf32> to vector<16xf32>
    %58 = vector.shape_cast %57 : vector<16xf32> to vector<16x1xf32>
    %59 = tpu.reciprocal %58 {approx = true} : vector<16x1xf32> -> vector<16x1xf32>
    %60 = vector.broadcast %59 : vector<16x1xf32> to vector<16x128xf32>
    %61 = arith.mulf %56, %60 : vector<16x128xf32>
    %62 = arith.truncf %61 : vector<16x128xf32> to vector<16x128xbf16>
    %c0_26 = arith.constant 0 : index
    %c0_27 = arith.constant 0 : index
    %c0_28 = arith.constant 0 : index
    %63 = vector.load %arg5[%c0_26, %c0_27, %c0_28] : memref<1x128x64xbf16, #tpu.memory_space<vmem>>, vector<1x128x64xbf16>
    %64 = vector.shape_cast %63 : vector<1x128x64xbf16> to vector<128x64xbf16>
    %cst_29 = arith.constant dense<0.000000e+00> : vector<16x64xf32>
    %65 = tpu.matmul %62, %64, %cst_29 {dimension_numbers = #tpu.dot_dimension_numbers<[1], [0], [0], [1], [0, 0, 1, 1], [], []>} : vector<16x128xbf16>, vector<128x64xbf16>, vector<16x64xf32> -> vector<16x64xf32>
    %66 = arith.truncf %65 : vector<16x64xf32> to vector<16x64xbf16>
    %cst_30 = arith.constant dense<0.000000e+00> : vector<16x64xf32>
    %67 = tpu.matmul %66, %10, %cst_30 {dimension_numbers = #tpu.dot_dimension_numbers<[1], [0], [0], [1], [0, 0, 1, 1], [], []>} : vector<16x64xbf16>, vector<64x64xbf16>, vector<16x64xf32> -> vector<16x64xf32>
    %cst_31 = arith.constant 0.000000e+00 : f32
    %68 = vector.broadcast %cst_31 : f32 to vector<16x64xf32>
    %69 = arith.maximumf %67, %68 : vector<16x64xf32>
    %70 = arith.truncf %69 : vector<16x64xf32> to vector<16x64xbf16>
    %cst_32 = arith.constant dense<0.000000e+00> : vector<16x64xf32>
    %71 = tpu.matmul %70, %11, %cst_32 {dimension_numbers = #tpu.dot_dimension_numbers<[1], [0], [0], [1], [0, 0, 1, 1], [], []>} : vector<16x64xbf16>, vector<64x64xbf16>, vector<16x64xf32> -> vector<16x64xf32>
    %72 = arith.truncf %71 : vector<16x64xf32> to vector<16x64xbf16>
    %cst_33 = arith.constant dense<0.000000e+00> : vector<16x128xf32>
    %73 = tpu.matmul %72, %41, %cst_33 {dimension_numbers = #tpu.dot_dimension_numbers<[1], [0], [0], [1], [0, 0, 1, 1], [], []>} : vector<16x64xbf16>, vector<64x128xbf16>, vector<16x128xf32> -> vector<16x128xf32>
    %74 = vector.broadcast %46 : vector<1x128xf32> to vector<16x128xf32>
    %75 = arith.addf %73, %74 : vector<16x128xf32>
    %76 = tpu.concatenate %72, %37 in 1 : vector<16x64xbf16>, vector<16x64xbf16> -> vector<16x128xbf16>
    %c0_34 = arith.constant 0 : index
    %c0_35 = arith.constant 0 : index
    %c0_36 = arith.constant 0 : index
    %77 = vector.load %arg6[%c0_34, %c0_35, %c0_36] : memref<1x128x64xbf16, #tpu.memory_space<vmem>>, vector<1x128x64xbf16>
    %78 = vector.shape_cast %77 : vector<1x128x64xbf16> to vector<128x64xbf16>
    %cst_37 = arith.constant dense<0.000000e+00> : vector<16x64xf32>
    %79 = tpu.matmul %76, %78, %cst_37 {dimension_numbers = #tpu.dot_dimension_numbers<[1], [0], [0], [1], [0, 0, 1, 1], [], []>} : vector<16x128xbf16>, vector<128x64xbf16>, vector<16x64xf32> -> vector<16x64xf32>
    %80 = vector.broadcast %48 : vector<1x64xf32> to vector<16x64xf32>
    %81 = arith.addf %79, %80 : vector<16x64xf32>
    %cst_38 = arith.constant 0.000000e+00 : f32
    %82 = vector.broadcast %cst_38 : f32 to vector<16x64xf32>
    %83 = arith.subf %82, %81 : vector<16x64xf32>
    %84 = math.exp %83 : vector<16x64xf32>
    %cst_39 = arith.constant 1.000000e+00 : f32
    %85 = vector.broadcast %cst_39 : f32 to vector<16x64xf32>
    %86 = arith.addf %85, %84 : vector<16x64xf32>
    %87 = tpu.reciprocal %86 {approx = true} : vector<16x64xf32> -> vector<16x64xf32>
    %88 = arith.mulf %87, %36 : vector<16x64xf32>
    %cst_40 = arith.constant 1.000000e+00 : f32
    %89 = vector.broadcast %cst_40 : f32 to vector<16x64xf32>
    %90 = arith.subf %89, %87 : vector<16x64xf32>
    %91 = arith.mulf %90, %71 : vector<16x64xf32>
    %92 = arith.addf %88, %91 : vector<16x64xf32>
    %93 = arith.truncf %92 : vector<16x64xf32> to vector<16x64xbf16>
    %cst_41 = arith.constant dense<0.000000e+00> : vector<16x128xf32>
    %94 = tpu.matmul %93, %40, %cst_41 {dimension_numbers = #tpu.dot_dimension_numbers<[1], [0], [0], [1], [0, 0, 1, 1], [], []>} : vector<16x64xbf16>, vector<64x128xbf16>, vector<16x128xf32> -> vector<16x128xf32>
    %95 = vector.broadcast %45 : vector<1x128xf32> to vector<16x128xf32>
    %96 = arith.addf %94, %95 : vector<16x128xf32>
    %c0_42 = arith.constant 0 : index
    %c0_43 = arith.constant 0 : index
    %c0_44 = arith.constant 0 : index
    %c0_45 = arith.constant 0 : index
    %97 = vector.load %arg9[%c0_42, %c0_43, %c0_44, %c0_45] : memref<1x3x16x128xf32, #tpu.memory_space<vmem>>, vector<1x1x16x128xf32>
    %98 = vector.shape_cast %97 : vector<1x1x16x128xf32> to vector<16x128xf32>
    %99 = vector.shape_cast %96 : vector<16x128xf32> to vector<1x1x16x128xf32>
    tpu.vector_store %arg9[%c0_42, %c0_43, %c0_44, %c0_45], %99 {strides = array<i32>} : memref<1x3x16x128xf32, #tpu.memory_space<vmem>>, vector<1x1x16x128xf32>,
    %c0_46 = arith.constant 0 : index
    %c1 = arith.constant 1 : index
    %c0_47 = arith.constant 0 : index
    %c0_48 = arith.constant 0 : index
    %100 = vector.load %arg9[%c0_46, %c1, %c0_47, %c0_48] : memref<1x3x16x128xf32, #tpu.memory_space<vmem>>, vector<1x1x16x128xf32>
    %101 = vector.shape_cast %100 : vector<1x1x16x128xf32> to vector<16x128xf32>
    %102 = vector.shape_cast %75 : vector<16x128xf32> to vector<1x1x16x128xf32>
    tpu.vector_store %arg9[%c0_46, %c1, %c0_47, %c0_48], %102 {strides = array<i32>} : memref<1x3x16x128xf32, #tpu.memory_space<vmem>>, vector<1x1x16x128xf32>,
    %c0_49 = arith.constant 0 : index
    %c2 = arith.constant 2 : index
    %c0_50 = arith.constant 0 : index
    %c0_51 = arith.constant 0 : index
    %103 = vector.load %arg9[%c0_49, %c2, %c0_50, %c0_51] : memref<1x3x16x128xf32, #tpu.memory_space<vmem>>, vector<1x1x16x128xf32>
    %104 = vector.shape_cast %103 : vector<1x1x16x128xf32> to vector<16x128xf32>
    %105 = vector.shape_cast %51 : vector<16x128xf32> to vector<1x1x16x128xf32>
    tpu.vector_store %arg9[%c0_49, %c2, %c0_50, %c0_51], %105 {strides = array<i32>} : memref<1x3x16x128xf32, #tpu.memory_space<vmem>>, vector<1x1x16x128xf32>,
    return
  }
  func.func @transform_0(%arg0: i32) -> (i32, i32, i32) {
    %c0_i32 = arith.constant 0 : i32
    %c0_i32_0 = arith.constant 0 : i32
    %c0_i32_1 = arith.constant 0 : i32
    return %arg0, %c0_i32, %c0_i32_0 : i32, i32, i32
  }
  func.func @transform_1(%arg0: i32) -> (i32, i32, i32) {
    %c0_i32 = arith.constant 0 : i32
    %c0_i32_0 = arith.constant 0 : i32
    %c0_i32_1 = arith.constant 0 : i32
    return %arg0, %c0_i32, %c0_i32_0 : i32, i32, i32
  }
  func.func @transform_2(%arg0: i32) -> (i32, i32, i32) {
    %c0_i32 = arith.constant 0 : i32
    %c0_i32_0 = arith.constant 0 : i32
    %c0_i32_1 = arith.constant 0 : i32
    return %arg0, %c0_i32, %c0_i32_0 : i32, i32, i32
  }
  func.func @transform_3(%arg0: i32) -> (i32, i32, i32) {
    %c0_i32 = arith.constant 0 : i32
    %c0_i32_0 = arith.constant 0 : i32
    %c0_i32_1 = arith.constant 0 : i32
    return %arg0, %c0_i32, %c0_i32_0 : i32, i32, i32
  }
  func.func @transform_4(%arg0: i32) -> (i32, i32, i32) {
    %c0_i32 = arith.constant 0 : i32
    %c0_i32_0 = arith.constant 0 : i32
    %c0_i32_1 = arith.constant 0 : i32
    return %arg0, %c0_i32, %c0_i32_0 : i32, i32, i32
  }
  func.func @transform_5(%arg0: i32) -> (i32, i32, i32) {
    %c0_i32 = arith.constant 0 : i32
    %c0_i32_0 = arith.constant 0 : i32
    %c0_i32_1 = arith.constant 0 : i32
    return %arg0, %c0_i32, %c0_i32_0 : i32, i32, i32
  }
  func.func @transform_6(%arg0: i32) -> (i32, i32, i32) {
    %c0_i32 = arith.constant 0 : i32
    %c0_i32_0 = arith.constant 0 : i32
    %c0_i32_1 = arith.constant 0 : i32
    return %arg0, %c0_i32, %c0_i32_0 : i32, i32, i32
  }
  func.func @transform_7(%arg0: i32) -> (i32, i32, i32) {
    %c0_i32 = arith.constant 0 : i32
    %c0_i32_0 = arith.constant 0 : i32
    %c0_i32_1 = arith.constant 0 : i32
    return %arg0, %c0_i32, %c0_i32_0 : i32, i32, i32
  }
  func.func @transform_8(%arg0: i32) -> (i32, i32, i32, i32) {
    %c0_i32 = arith.constant 0 : i32
    %c0_i32_0 = arith.constant 0 : i32
    %c0_i32_1 = arith.constant 0 : i32
    %c0_i32_2 = arith.constant 0 : i32
    return %arg0, %c0_i32, %c0_i32_0, %c0_i32_1 : i32, i32, i32, i32
  }
}

</mosaic_0001>

<bundles_post_ra>
// kernel: tpu_custom_call.1
= control target key start
LH: loop header
LB: loop body
LE: loop exit
PB: predicated region body
PF: predicated region fallthrough
CT: control target
= control target key end

     0   :  { %13 = vsyncpa [#allocation3], 0  ;;  %s3076_s0 = inlined_call_operand.vmem [shape: bf16[2,128,48], index: 0, kind: input, shape index: {}]   ;;  %s3077_s1 = inlined_call_operand.vmem [shape: bf16[2,8,64], index: 1, kind: input, shape index: {}]   ;;  %s3078_s2 = inlined_call_operand.vmem [shape: bf16[2,48,64], index: 2, kind: input, shape index: {}]   ;;  %s3079_s3 = inlined_call_operand.vmem [shape: bf16[2,256,64], index: 3, kind: input, shape index: {}]   ;;  %s3080_s4 = inlined_call_operand.vmem [shape: bf16[2,128,64], index: 4, kind: input, shape index: {}]   ;;  %s3081_s5 = inlined_call_operand.vmem [shape: bf16[2,128,64], index: 5, kind: input, shape index: {}]   ;;  %s3082_s6 = inlined_call_operand.vmem [shape: bf16[2,192,128], index: 6, kind: input, shape index: {}]   ;;  %s3083_s7 = inlined_call_operand.vmem [shape: f32[2,4,128], index: 7, kind: input, shape index: {}]   ;;  %s3084_s8 = inlined_call_operand.hbm [shape: f32[2,3,16,128], index: 8, kind: output, shape index: {}]  }
   0x1   :  { %15 = vsyncpa [#allocation3 + $0x1], 0  ;;  %s2664_s27 = smov 0   ;;  %s2666_s28 = smov 0  }
   0x2   :  { %s2668_s29 = smov 0   ;;  %s2670_s30 = smov 0  }
   0x3 LB: > { %s2685_s9 = sadd.s32 4294967295, %s2611_s30   ;;  %s1991_s10 = sadd.s32 4294967294, %s2611_s30   ;;  %s2611_s30 = sphi %s2670_s30, %s3090_s30   ;;  %s2607_s29 = sphi %s2668_s29, %s3089_s29   ;;  %s2603_s28 = sphi %s2666_s28, %s3088_s28   ;;  %s2599_s27 = sphi %s2664_s27, %s3087_s27  }
   0x4   : > { %s2689_s11 = sadd.s32 1, %s2611_s30   ;;  %s236_s12 = sadd.s32 1, %s2607_s29 }
   0x5   : > { %s233_s13 = ssub.s32 %s2611_s30, %s2689_s11  ;;  %p246_p0 = scmp.ne.s32.totalorder %s2607_s29, %s2603_s28 }
   0x6   : > { %p234_p1 = scmp.eq.s32.totalorder %s233_s13, 0  ;;  %p247_p2 = scmp.eq.s32.totalorder %s2685_s9, 1 }
   0x7   : > { %p252_p3 = scmp.ne.s32.totalorder %s2603_s28, %s2599_s27  ;;  %p253_p4 = scmp.eq.s32.totalorder %s1991_s10, 1 }
   0x8   : > { %s2700_s14 = scalar_select %p234_p1, %s2607_s29, %s236_s12  }
   0x9   : > { %p2702_p5 = por %p247_p2, %p246_p0  ;;  %p2706_p6 = por %p253_p4, %p252_p3 }
   0xa   : > { %p1994_p7 = scmp.ge.s32.totalorder %s2611_s30, 1  ;;  %p333_p8 = scmp.lt.s32.totalorder %s2611_s30, 3 }
   0xc   : > { %p334_p9 = pnand %p1994_p7, %p333_p8 }
   0xd   : > { %p400_p10 = scmp.lt.s32.totalorder (!%p334_p9), %s2685_s9, 1  ;;  %vm519_vm0 = vcmask (!%p334_p9), 392192   ;;  %vm705_vm1 = vcmask (!%p334_p9), 523264   ;;  %v2613_v43 = vmov (!%p334_p9), 0.0   ;;  %vm2614_vm2 = vmmov (!%p334_p9), 0   ;;  %s397_s12 = sand.u32 (!%p334_p9), 1, %s2603_s28  }
   0xe   : > { %337 = sbr.rel (%p334_p9) target bundleno = 2928 (0xb70), region = 52  ;;  %s2616_s24 = smov (!%p334_p9), [#allocation2]  }
  0x15   : > { %s2714_s17 = scalar_select %p400_p10, %s2685_s9, 1 }
  0x17   : > { %s2717_s18 = sshll.u32 %s2714_s17, 6  ;;  %s2423_s19 = smul.u32 24, %s2714_s17 }
  0x18   : > { %s2724_s22 = scalar_lea.vmem %s3076_s0, %s2717_s18  ;;  %s2103_s26 = sshll.u32 %s2714_s17, 7 }
  0x19   : > { %s413_s25 = scalar_lea.vmem %s3078_s2, %s2423_s19  ;;  %v2473_v0 = vld [vmem:[%s2724_s22] sm:$0xff]   ;;  %s2735_s13 = scalar_lea.vmem %s3079_s3, %s2103_s26  ;;  %v2474_v4 = vld [vmem:[%s2724_s22 + $0x8] sm:$0xff]   ;;  %v2475_v5 = vld [vmem:[%s2724_s22 + $0x10] sm:$0xff]  }
  0x1a   : > { %v2470_v1 = vld [vmem:[%s413_s25] sm:$0xff]   ;;  %v2471_v2 = vld [vmem:[%s413_s25 + $0x8] sm:$0xff]   ;;  %2210 = vmatprep.mubr.msk.bf16.mxu0 %vm519_vm0, %v2473_v0  ;;  %v2472_v3 = vld [vmem:[%s413_s25 + $0x10] sm:$0xff]   ;;  %s2424_s19 = smul.u32 96, %s2714_s17  ;;  %s2759_s26 = scalar_lea.vmem %s3080_s4, %s2717_s18 }
  0x1b   : > { %2204 = vmatprep.subr.bf16.mxu0 %v2470_v1  ;;  %v2481_v6 = vld [vmem:[%s2735_s13] sm:$0xff]   ;;  %v2483_v8 = vld [vmem:[%s2735_s13 + $0x8] sm:$0xff]   ;;  %v2485_v10 = vld [vmem:[%s2735_s13 + $0x10] sm:$0xff]   ;;  %s2553_s25 = sshll.u32 %s2616_s24, 4  ;;  %s2554_s25 = int_to_ptr.vmem [resolvable:$false] %s2553_s25 }
  0x1c   : > { %2205 = vmatpush3.bf16.msra.mxu0 %v2470_v1  ;;  %v2482_v7 = vld [vmem:[%s2735_s13 + $0x20] sm:$0xff]   ;;  %2226 = vmatprep.subr.bf16.mxu1 %v2481_v6  ;;  %v2484_v9 = vld [vmem:[%s2735_s13 + $0x28] sm:$0xff]   ;;  %v2486_v11 = vld [vmem:[%s2735_s13 + $0x30] sm:$0xff]   ;;  %s2751_s23 = scalar_lea.vmem %s3082_s6, %s2424_s19  ;;  %s2769_s19 = scalar_lea.vmem %s3081_s5, %s2717_s18 }
  0x1d   : > { %2206 = vmatprep.subr.bf16.mxu0 %v2471_v2  ;;  %2227 = vmatpush3.bf16.msra.mxu1 %v2481_v6  ;;  %v2476_v12 = vld [vmem:[%s2724_s22 + $0x18] sm:$0xff]   ;;  %v2477_v13 = vld [vmem:[%s2724_s22 + $0x20] sm:$0xff]   ;;  %v2478_v14 = vld [vmem:[%s2724_s22 + $0x28] sm:$0xff]   ;;  %s1997_s18 = sshll.u32 %s2714_s17, 2 }
  0x1e   : > { %2228 = vmatprep.subr.bf16.mxu1 %v2483_v8  ;;  %v2479_v15 = vld [vmem:[%s2724_s22 + $0x30] sm:$0xff]   ;;  %v2480_v16 = vld [vmem:[%s2724_s22 + $0x38] sm:$0xff]   ;;  %s408_s21 = scalar_lea.vmem %s3077_s1, %s1997_s18  ;;  %s437_s10 = scalar_lea.vmem %s3083_s7, %s1997_s18 }
  0x1f   : > { %v2487_v17 = vld [vmem:[%s2735_s13 + $0x18] sm:$0xff]   ;;  %s2422_s22 = smul.u32 48, %s397_s12  ;;  %s2615_s18 = smov 64  }
  0x20   : > { %2207 = vmatpush3.bf16.msra.mxu0 %v2471_v2  ;;  %v2488_v18 = vld [vmem:[%s2735_s13 + $0x38] sm:$0xff]  }
  0x21   : > { %2208 = vmatprep.subr.bf16.mxu0 %v2472_v3  ;;  %2229 = vmatpush3.bf16.msra.mxu1 %v2483_v8  ;;  %s2933_s17 = scalar_lea.vmem [#allocation2], %s2422_s22 }
  0x22   : > { %2230 = vmatprep.subr.bf16.mxu1 %v2485_v10 }
  0x24   : > { %2209 = vmatpush3.bf16.msra.mxu0 %v2472_v3 }
  0x25   : > { %2250 = vmatprep.subr.bf16.mxu0 %v2482_v7  ;;  %2231 = vmatpush3.bf16.msra.mxu1 %v2485_v10 }
  0x26   : > { %2232 = vmatprep.subr.bf16.mxu1 %v2487_v17 }
  0x27   : > { %2211 = vmatmul.mubr.msk.bf16.vlgmr.msra.gmra.mrb[0].mxu0 %vm519_vm0, %v2474_v4 }
  0x28   : > { %2214 = vmatprep.mubr.msk.bf16.mxu0 %vm519_vm0, %v2475_v5  ;;  %2251 = vmatpush3.bf16.msra.mxu0 %v2482_v7 }
  0x29   : > { %2252 = vmatprep.subr.bf16.mxu0 %v2484_v9  ;;  %2233 = vmatpush3.bf16.msra.mxu1 %v2487_v17 }
  0x2a   : > { %2274 = vmatprep.subr.bf16.mxu1 %v2613_v43 }
  0x2c   : > { %2253 = vmatpush3.bf16.msra.mxu0 %v2484_v9 }
  0x2d   : > { %2254 = vmatprep.subr.bf16.mxu0 %v2486_v11 }
  0x2f   : > { %2215 = vmatmul.mubr.msk.bf16.gmra.mrb[4].mxu0 %vm519_vm0, %v2476_v12 }
  0x30   : > { %2218 = vmatprep.mubr.msk.bf16.mxu0 %vm519_vm0, %v2477_v13  ;;  %2255 = vmatpush3.bf16.msra.mxu0 %v2486_v11 }
  0x31   : > { %2256 = vmatprep.subr.bf16.mxu0 %v2488_v18 }
  0x34   : > { %2257 = vmatpush3.bf16.msra.mxu0 %v2488_v18 }
  0x35   : > { %2286 = vmatprep.subr.bf16.mxu0 %v2613_v43 }
  0x37   : > { %2219 = vmatmul.mubr.msk.bf16.gmra.mrb[8].mxu0 %vm519_vm0, %v2478_v14 }
  0x38   : > { %2222 = vmatprep.mubr.msk.bf16.mxu0 %vm519_vm0, %v2479_v15 }
  0x3f   : > { %2223 = vmatmul.mubr.msk.bf16.gmra.mrb[12].mxu0 %vm519_vm0, %v2480_v16 }
  0xfa   : > { %v2212_v19 = vpop.f32.mrb[0].mxu0 }
  0xfb   : > { %v578_v20 = vpop.f32.mrb[1].mxu0 }
  0xfc   : > { %v2213_v21 = vpop.f32.mrb[2].mxu0 }
  0xfd   : > { %v642_v22 = vpack.c.bf16 %v2213_v21, %v2212_v19  ;;  %v581_v23 = vpop.f32.mrb[3].mxu0 }
  0xfe   : > { %v641_v24 = vpack.c.bf16 %v581_v23, %v578_v20 }
 0x100   : > { %2234 = vmatprep.mubr.msk.bf16.mxu1 %vm705_vm1, %v641_v24  ;;  %2258 = vmatprep.mubr.msk.bf16.mxu0 %vm705_vm1, %v641_v24 }
 0x101   : > { %2235 = vmatmul.mubr.msk.bf16.vlgmr.msra.gmra.mrb[0].mxu1 %vm705_vm1, %v642_v22  ;;  %2259 = vmatmul.mubr.msk.bf16.vlgmr.msra.gmra.mrb[16].mxu0 %vm705_vm1, %v642_v22 }
 0x102   : > { %v2216_v25 = vpop.f32.mrb[4].mxu0 }
 0x103   : > { %v594_v26 = vpop.f32.mrb[5].mxu0 }
 0x104   : > { %v2217_v27 = vpop.f32.mrb[6].mxu0 }
 0x105   : > { %v644_v28 = vpack.c.bf16 %v2217_v27, %v2216_v25  ;;  %v597_v29 = vpop.f32.mrb[7].mxu0 }
 0x106   : > { %v643_v30 = vpack.c.bf16 %v597_v29, %v594_v26 }
 0x108   : > { %2238 = vmatprep.mubr.msk.bf16.mxu1 %vm705_vm1, %v643_v30  ;;  %2262 = vmatprep.mubr.msk.bf16.mxu0 %vm705_vm1, %v643_v30 }
 0x109   : > { %2239 = vmatmul.mubr.msk.bf16.gmra.mrb[4].mxu1 %vm705_vm1, %v644_v28  ;;  %2263 = vmatmul.mubr.msk.bf16.gmra.mrb[20].mxu0 %vm705_vm1, %v644_v28 }
 0x10a   : > { %v2220_v31 = vpop.f32.mrb[8].mxu0 }
 0x10b   : > { %v610_v32 = vpop.f32.mrb[9].mxu0 }
 0x10c   : > { %v2221_v33 = vpop.f32.mrb[10].mxu0 }
 0x10d   : > { %v646_v34 = vpack.c.bf16 %v2221_v33, %v2220_v31  ;;  %v613_v35 = vpop.f32.mrb[11].mxu0 }
 0x10e   : > { %v645_v36 = vpack.c.bf16 %v613_v35, %v610_v32 }
 0x110   : > { %2242 = vmatprep.mubr.msk.bf16.mxu1 %vm705_vm1, %v645_v36  ;;  %2266 = vmatprep.mubr.msk.bf16.mxu0 %vm705_vm1, %v645_v36 }
 0x111   : > { %2243 = vmatmul.mubr.msk.bf16.gmra.mrb[8].mxu1 %vm705_vm1, %v646_v34  ;;  %2267 = vmatmul.mubr.msk.bf16.gmra.mrb[24].mxu0 %vm705_vm1, %v646_v34  ;;  %v964_v34 = vld [vmem:[%s408_s21] sm:$0xf] }
 0x112   : > { %v2224_v37 = vpop.f32.mrb[12].mxu0 }
 0x113   : > { %v626_v38 = vpop.f32.mrb[13].mxu0 }
 0x114   : > { %v2225_v39 = vpop.f32.mrb[14].mxu0 }
 0x115   : > { %v648_v40 = vpack.c.bf16 %v2225_v39, %v2224_v37  ;;  %v629_v41 = vpop.f32.mrb[15].mxu0 }
 0x116   : > { %v647_v42 = vpack.c.bf16 %v629_v41, %v626_v38 }
 0x118   : > { %2246 = vmatprep.mubr.msk.bf16.mxu1 %vm705_vm1, %v647_v42  ;;  %2270 = vmatprep.mubr.msk.bf16.mxu0 %vm705_vm1, %v647_v42 }
 0x119   : > { %2247 = vmatmul.mubr.msk.bf16.gmra.mrb[12].mxu1 %vm705_vm1, %v648_v40  ;;  %2271 = vmatmul.mubr.msk.bf16.gmra.mrb[28].mxu0 %vm705_vm1, %v648_v40 }
 0x11a   : > { %2282 = vmatprep.mubr.msk.bf16.mxu1 %vm2614_vm2, %v2613_v43  ;;  %2294 = vmatprep.mubr.msk.bf16.mxu0 %vm2614_vm2, %v2613_v43 }
 0x1d4   : > { %v2236_v44 = vpop.f32.mrb[0].mxu1  ;;  %v2799_v45 = vpop.f32.mrb[16].mxu0 }
 0x1d5   : > { %v764_v46 = vpop.f32.mrb[1].mxu1  ;;  %v2801_v47 = vpop.f32.mrb[17].mxu0 }
 0x1d6   : > { %v2237_v48 = vpop.f32.mrb[2].mxu1  ;;  %v2803_v49 = vpop.f32.mrb[18].mxu0 }
 0x1d7   : > { %v828_v50 = vpack.c.bf16 %v2237_v48, %v2236_v44  ;;  %v957_v51 = vpack.c.bf16 %v2803_v49, %v2799_v45  ;;  %v767_v52 = vpop.f32.mrb[3].mxu1  ;;  %v2807_v53 = vpop.f32.mrb[19].mxu0 }
 0x1d8   : > { %v827_v54 = vpack.c.bf16 %v767_v52, %v764_v46  ;;  %v956_v55 = vpack.c.bf16 %v2807_v53, %v2801_v47 }
 0x1d9   : > { %v972_v5 = vsel %vm705_vm1, %v828_v50, 0 }
 0x1da   : > { %v969_v56 = vsel %vm705_vm1, %v827_v54, 0 }
 0x1db   : > { %2275 = vmatpush3.bf16.xpose.msra.mxu1 %v969_v56 }
 0x1dc   : > { %v2240_v57 = vpop.f32.mrb[4].mxu1  ;;  %v2812_v58 = vpop.f32.mrb[20].mxu0  ;;  %2276 = vmatprep.subr.bf16.mxu1 %v2613_v43 }
 0x1dd   : > { %v780_v59 = vpop.f32.mrb[5].mxu1  ;;  %v909_v60 = vpop.f32.mrb[21].mxu0 }
 0x1de   : > { %v2241_v61 = vpop.f32.mrb[6].mxu1  ;;  %v2815_v62 = vpop.f32.mrb[22].mxu0 }
 0x1df   : > { %v830_v63 = vpack.c.bf16 %v2241_v61, %v2240_v57  ;;  %v959_v0 = vpack.c.bf16 %v2815_v62, %v2812_v58  ;;  %v783_v1 = vpop.f32.mrb[7].mxu1  ;;  %v912_v2 = vpop.f32.mrb[23].mxu0 }
 0x1e0   : > { %v829_v3 = vpack.c.bf16 %v783_v1, %v780_v59  ;;  %v958_v4 = vpack.c.bf16 %v912_v2, %v909_v60  ;;  %v2489_v2 = vld [vmem:[%s2751_s23 + $0x40] sm:$0xff]  }
 0x1e1   : > { %v978_v32 = vsel %vm705_vm1, %v830_v63, 0 }
 0x1e2   : > { %v975_v18 = vsel %vm705_vm1, %v829_v3, 0  ;;  %v2490_v3 = vld [vmem:[%s2751_s23 + $0x48] sm:$0xff]  }
 0x1e3   : > { %2277 = vmatpush3.bf16.xpose.msra.mxu1 %v972_v5  ;;  %v2492_v5 = vld [vmem:[%s2751_s23 + $0x58] sm:$0xff]  }
 0x1e4   : > { %v2244_v6 = vpop.f32.mrb[8].mxu1  ;;  %v2820_v7 = vpop.f32.mrb[24].mxu0  ;;  %2278 = vmatprep.subr.bf16.mxu1 %v2613_v43 }
 0x1e5   : > { %v796_v8 = vpop.f32.mrb[9].mxu1  ;;  %v2823_v9 = vpop.f32.mrb[25].mxu0 }
 0x1e6   : > { %v2245_v10 = vpop.f32.mrb[10].mxu1  ;;  %v2825_v11 = vpop.f32.mrb[26].mxu0 }
 0x1e7   : > { %v832_v12 = vpack.c.bf16 %v2245_v10, %v2244_v6  ;;  %v961_v13 = vpack.c.bf16 %v2825_v11, %v2820_v7  ;;  %v799_v14 = vpop.f32.mrb[11].mxu1  ;;  %v2829_v15 = vpop.f32.mrb[27].mxu0 }
 0x1e8   : > { %v831_v16 = vpack.c.bf16 %v799_v14, %v796_v8  ;;  %v960_v17 = vpack.c.bf16 %v2829_v15, %v2823_v9  ;;  %v1208_v15 = vlaneseq }
 0x1e9   : > { %v1024_v33 = vsel %vm705_vm1, %v832_v12, 0 }
 0x1ea   : > { %v1021_v19 = vsel %vm705_vm1, %v831_v16, 0  ;;  %v2919_v16 = vshrl.u32 %v1208_v15, 7  ;;  %v2514_v15 = vld [vmem:[%s2769_s19 + $0x20] sm:$0xff]  }
 0x1eb   : > { %2279 = vmatpush3.bf16.xpose.msra.mxu1 %v975_v18  ;;  %2287 = vmatpush3.bf16.xpose.msra.mxu0 %v1021_v19  ;;  %v2928_v18 = vld [vmem:[%s437_s10] sm:$0xf]  ;;  %s2555_s10 = scalar_lea.vmem %s2554_s25, 1536 }
 0x1ec   : > { %v2248_v20 = vpop.f32.mrb[12].mxu1  ;;  %v2835_v21 = vpop.f32.mrb[28].mxu0  ;;  %2280 = vmatprep.subr.bf16.mxu1 %v2613_v43  ;;  %2288 = vmatprep.subr.bf16.mxu0 %v2613_v43 }
 0x1ed   : > { %v812_v22 = vpop.f32.mrb[13].mxu1  ;;  %v2839_v23 = vpop.f32.mrb[29].mxu0 }
 0x1ee   : > { %v2249_v24 = vpop.f32.mrb[14].mxu1  ;;  %v2841_v25 = vpop.f32.mrb[30].mxu0 }
 0x1ef   : > { %v834_v26 = vpack.c.bf16 %v2249_v24, %v2248_v20  ;;  %v963_v27 = vpack.c.bf16 %v2841_v25, %v2835_v21  ;;  %v815_v28 = vpop.f32.mrb[15].mxu1  ;;  %v2845_v29 = vpop.f32.mrb[31].mxu0 }
 0x1f0   : > { %v833_v30 = vpack.c.bf16 %v815_v28, %v812_v22  ;;  %v962_v31 = vpack.c.bf16 %v2845_v29, %v2839_v23  ;;  %v2495_v28 = vld [vmem:[%s2759_s26 + $0x10] sm:$0xff]   ;;  %v2496_v29 = vld [vmem:[%s2759_s26 + $0x18] sm:$0xff]  }
 0x1f1   : > { %v1030_v36 = vsel %vm705_vm1, %v834_v26, 0  ;;  %v2493_v26 = vld [vmem:[%s2759_s26] sm:$0xff]  }
 0x1f2   : > { %v1027_v35 = vsel %vm705_vm1, %v833_v30, 0 }
 0x1f3   : > { %2281 = vmatpush3.bf16.xpose.msra.mxu1 %v978_v32  ;;  %2289 = vmatpush3.bf16.xpose.msra.mxu0 %v1024_v33 }
 0x1f4   : > { %2290 = vmatprep.subr.bf16.mxu0 %v2613_v43  ;;  %2298 = vmatprep.subr.bf16.mxu1 %v2613_v43 }
 0x1fa   : > { %2283 = vmatmul.mubr.msk.bf16.vlgmr.msra.gmra.mrb[16].mxu1 %vm705_vm1, %v964_v34 }
 0x1fb   : > { %2291 = vmatpush3.bf16.xpose.msra.mxu0 %v1027_v35  ;;  %2299 = vmatpush3.bf16.msra.mxu1 %v956_v55 }
 0x1fc   : > { %2300 = vmatprep.subr.bf16.mxu1 %v2613_v43  ;;  %2292 = vmatprep.subr.bf16.mxu0 %v2613_v43 }
 0x1fd   : > { %2306 = vmatprep.mubr.msk.bf16.mxu1 %vm2614_vm2, %v2613_v43 }
 0x1ff   : > { %2301 = vmatpush3.bf16.msra.mxu1 %v957_v51 }
 0x200   : > { %2302 = vmatprep.subr.bf16.mxu1 %v2613_v43 }
 0x203   : > { %2293 = vmatpush3.bf16.xpose.msra.mxu0 %v1030_v36  ;;  %2303 = vmatpush3.bf16.msra.mxu1 %v958_v4  ;;  %v2491_v4 = vld [vmem:[%s2751_s23 + $0x50] sm:$0xff]  }
 0x204   : > { %2304 = vmatprep.subr.bf16.mxu1 %v2613_v43  ;;  %2322 = vmatprep.subr.bf16.mxu0 %v2613_v43 }
 0x207   : > { %2305 = vmatpush3.bf16.msra.mxu1 %v959_v0 }
 0x208   : > { %2310 = vmatprep.subr.bf16.mxu1 %v2613_v43 }
 0x20a   : > { %2295 = vmatmul.mubr.msk.bf16.vlgmr.msra.gmra.mrb[32].mxu0 %vm705_vm1, %v964_v34 }
 0x20b   : > { %2330 = vmatprep.mubr.msk.bf16.mxu0 %vm2614_vm2, %v2613_v43  ;;  %2323 = vmatpush3.bf16.msra.mxu0 %v2489_v2 }
 0x20c   : > { %2324 = vmatprep.subr.bf16.mxu0 %v2613_v43 }
 0x20f   : > { %2325 = vmatpush3.bf16.msra.mxu0 %v2490_v3 }
 0x210   : > { %2326 = vmatprep.subr.bf16.mxu0 %v2613_v43 }
 0x213   : > { %2327 = vmatpush3.bf16.msra.mxu0 %v2491_v4 }
 0x214   : > { %2328 = vmatprep.subr.bf16.mxu0 %v2613_v43 }
 0x217   : > { %2329 = vmatpush3.bf16.msra.mxu0 %v2492_v5 }
 0x218   : > { %2354 = vmatprep.subr.bf16.mxu0 %v2613_v43 }
 0x2cd   : > { %v1014_v37 = vpop.f32.mrb[16].mxu1 }
 0x2ce   : > { %v2284_v38 = vpop.f32.mrb[17].mxu1  ;;  %v1072_v39 = vsel %vm705_vm1, %v1014_v37, -inf }
 0x2cf   : > { %1073 = vmax.xlane.f32.xlu0 %v1072_v39  ;;  %v1017_v40 = vpop.f32.mrb[18].mxu1  ;;  %v2497_v38 = vld [vmem:[%s2759_s26 + $0x20] sm:$0xff]   ;;  %v2498_v39 = vld [vmem:[%s2759_s26 + $0x28] sm:$0xff]  }
 0x2d0   : > { %v2285_v41 = vpop.f32.mrb[19].mxu1  ;;  %v2499_v40 = vld [vmem:[%s2759_s26 + $0x30] sm:$0xff]  }
 0x2d1   : > { %v2500_v41 = vld [vmem:[%s2759_s26 + $0x38] sm:$0xff]  }
 0x2dd   : > { %v1066_v42 = vpop.f32.mrb[32].mxu0 }
 0x2de   : > { %v2296_v44 = vpop.f32.mrb[33].mxu0  ;;  %v1075_v45 = vsel %vm705_vm1, %v1066_v42, -inf }
 0x2df   : > { %1076 = vmax.xlane.f32.xlu0 %v1075_v45  ;;  %v1069_v46 = vpop.f32.mrb[34].mxu0  ;;  %v2502_v44 = vld [vmem:[%s2735_s13 + $0x48] sm:$0xff]   ;;  %v2503_v45 = vld [vmem:[%s2735_s13 + $0x50] sm:$0xff]  }
 0x2e0   : > { %v2297_v47 = vpop.f32.mrb[35].mxu0 }
 0x35c   : > { %v1074_v48 = vpop.xlane.xlu0 %1073 }
 0x35d   : > { %v1078_v49 = vsub.f32 %v1014_v37, %v1074_v48 }
 0x35f   : > { %v1080_v50 = vmul.f32 1.442695, %v1078_v49 }
 0x361   : > { %2525 = vpow2.f32 %v1080_v50 }
 0x36b   : > { %v2526_v51 = vpop.eup %2525 }
 0x36c   : > { %v1077_v52 = vpop.xlane.xlu0 %1076  ;;  %v1084_v53 = vsel %vm705_vm1, %v2526_v51, 0.0 }
 0x36d   : > { %v1079_v54 = vsub.f32 %v1066_v42, %v1077_v52  ;;  %1085 = vadd.xlane.f32.xlu1 %v1084_v53  ;;  %v2501_v42 = vld [vmem:[%s2735_s13 + $0x40] sm:$0xff]   ;;  %v2504_v53 = vld [vmem:[%s2735_s13 + $0x58] sm:$0xff]  }
 0x36f   : > { %v1082_v55 = vmul.f32 1.442695, %v1079_v54 }
 0x371   : > { %2527 = vpow2.f32 %v1082_v55 }
 0x37b   : > { %v2528_v56 = vpop.eup %2527 }
 0x37c   : > { %v1087_v57 = vsel %vm705_vm1, %v2528_v56, 0.0 }
 0x37d   : > { %1088 = vadd.xlane.f32.xlu1 %v1087_v57  ;;  %v2505_v57 = vld [vmem:[%s2735_s13 + $0x60] sm:$0xff]  }
 0x3fa   : > { %v1086_v58 = vpop.xlane.xlu1 %1085 }
 0x3fb   : > { %2529 = vrcp.f32 %v1086_v58 }
 0x405   : > { %v2530_v59 = vpop.eup %2529 }
 0x406   : > { %v1092_v60 = vmul.f32 %v2530_v59, %v2526_v51 }
 0x408   : > { %v1094_v61 = vpack.c.bf16 %v1092_v60, %v1092_v60  ;;  %v2506_v60 = vld [vmem:[%s2735_s13 + $0x68] sm:$0xff]  }
 0x40a   : > { %2307 = vmatmul.mubr.msk.bf16.vlgmr.msra.gmra.mrb[20].mxu1 %vm705_vm1, %v1094_v61  ;;  %v1089_v62 = vpop.xlane.xlu1 %1088  ;;  %v2507_v61 = vld [vmem:[%s2735_s13 + $0x70] sm:$0xff]  }
 0x40b   : > { %2311 = vmatpush3.bf16.msra.mxu1 %v960_v17  ;;  %2531 = vrcp.f32 %v1089_v62  ;;  %2318 = vmatprep.mubr.msk.bf16.mxu1 %vm2614_vm2, %v2613_v43  ;;  %v1210_v17 = vsub.s32 2, %v2919_v16  ;;  %v2508_v62 = vld [vmem:[%s2735_s13 + $0x78] sm:$0xff]   ;;  %s1845_s13 = sshll.u32 %s2933_s17, 4  ;;  %s3024_s13 = int_to_ptr.vmem [resolvable:$true] %s1845_s13 }
 0x40c   : > { %2312 = vmatprep.subr.bf16.mxu1 %v2613_v43  ;;  %s2549_s21 = scalar_lea.vmem %s3024_s13, 768  ;;  %p2556_p0 = scmp.lt.s32.totalorder %s3024_s13, %s2554_s25 }
 0x40d   : > { %v1211_v19 = vrot.slane %v2928_v18, %v1210_v17  ;;  %v2516_v17 = vld [vmem:[%s2769_s19 + $0x28] sm:$0xff]   ;;  %p2550_p11 = scmp.ne.s32.totalorder %s3024_s13, %s2549_s21  ;;  %p2557_p1 = scmp.lt.s32.totalorder %s2555_s10, %s2549_s21 }
 0x40f   : > { %2313 = vmatpush3.bf16.msra.mxu1 %v961_v13  ;;  %p2551_p12 = pnand %p2550_p11, %p2702_p5  ;;  %p2558_p2 = por %p2557_p1, %p2556_p0 }
 0x410   : > { %2314 = vmatprep.subr.bf16.mxu1 %v2613_v43 }
 0x411   : > { %p2552_p13 = pneg %p2551_p12 }
 0x413   : > { %2315 = vmatpush3.bf16.msra.mxu1 %v962_v31  ;;  %p2559_p3 = pnand %p2558_p2, %p2552_p13 }
 0x414   : > { %2316 = vmatprep.subr.bf16.mxu1 %v2613_v43 }
 0x415   : > { %v2532_v63 = vpop.eup %2531 }
 0x416   : > { %v1093_v0 = vmul.f32 %v2532_v63, %v2528_v56  ;;  %v2513_v63 = vld [vmem:[%s2751_s23 + $0x20] sm:$0xff]  }
 0x417   : > { %2317 = vmatpush3.bf16.msra.mxu1 %v963_v27  ;;  %v2494_v27 = vld [vmem:[%s2759_s26 + $0x8] sm:$0xff]  }
 0x418   : > { %v1095_v1 = vpack.c.bf16 %v1093_v0, %v1093_v0  ;;  %2334 = vmatprep.subr.bf16.mxu1 %v2613_v43  ;;  %v2515_v0 = vld [vmem:[%s2751_s23 + $0x28] sm:$0xff]  }
 0x41a   : > { %2319 = vmatmul.mubr.msk.bf16.vlgmr.msra.gmra.mrb[24].mxu1 %vm705_vm1, %v1095_v1  ;;  %v2517_v1 = vld [vmem:[%s2751_s23 + $0x30] sm:$0xff]  }
 0x41b   : > { %2350 = vmatprep.mubr.msk.bf16.mxu1 %vm2614_vm2, %v2613_v43  ;;  %2335 = vmatpush3.bf16.msra.mxu1 %v2493_v26 }
 0x41c   : > { %2336 = vmatprep.subr.bf16.mxu1 %v2613_v43 }
 0x41f   : > { %2337 = vmatpush3.bf16.msra.mxu1 %v2494_v27 }
 0x420   : > { %2338 = vmatprep.subr.bf16.mxu1 %v2613_v43 }
 0x423   : > { %2339 = vmatpush3.bf16.msra.mxu1 %v2495_v28 }
 0x424   : > { %2340 = vmatprep.subr.bf16.mxu1 %v2613_v43 }
 0x427   : > { %2341 = vmatpush3.bf16.msra.mxu1 %v2496_v29  ;;  %v2521_v29 = vld [vmem:[%s2751_s23] sm:$0xff]  }
 0x428   : > { %2342 = vmatprep.subr.bf16.mxu1 %v2613_v43 }
 0x42b   : > { %2343 = vmatpush3.bf16.msra.mxu1 %v2497_v38 }
 0x42c   : > { %2344 = vmatprep.subr.bf16.mxu1 %v2613_v43 }
 0x42f   : > { %2345 = vmatpush3.bf16.msra.mxu1 %v2498_v39 }
 0x430   : > { %2346 = vmatprep.subr.bf16.mxu1 %v2613_v43 }
 0x433   : > { %2347 = vmatpush3.bf16.msra.mxu1 %v2499_v40 }
 0x434   : > { %2348 = vmatprep.subr.bf16.mxu1 %v2613_v43 }
 0x437   : > { %2349 = vmatpush3.bf16.msra.mxu1 %v2500_v41 }
 0x438   : > { %2378 = vmatprep.subr.bf16.mxu1 %v2613_v43 }
 0x4dd   : > { %v2910_v6 = vpop.f32.mrb[20].mxu1 }
 0x4de   : > { %v2308_v7 = vpop.f32.mrb[21].mxu1 }
 0x4df   : > { %v1136_v8 = vpop.f32.mrb[22].mxu1 }
 0x4e0   : > { %v2309_v9 = vpop.f32.mrb[23].mxu1 }
 0x4e1   : > { %v2509_v9 = vld [vmem:[%s2769_s19] sm:$0xff]  }
 0x4ed   : > { %v2912_v10 = vpop.f32.mrb[24].mxu1 }
 0x4ee   : > { %v1182_v11 = vpack.c.bf16 %v2912_v10, %v2910_v6  ;;  %v2320_v12 = vpop.f32.mrb[25].mxu1 }
 0x4ef   : > { %v1179_v13 = vpop.f32.mrb[26].mxu1  ;;  %v2510_v12 = vld [vmem:[%s2769_s19 + $0x8] sm:$0xff]  }
 0x4f0   : > { %v2321_v14 = vpop.f32.mrb[27].mxu1  ;;  %2331 = vmatmul.mubr.msk.bf16.vlgmr.msra.gmra.mrb[36].mxu0 %vm705_vm1, %v1182_v11  ;;  %v2511_v13 = vld [vmem:[%s2769_s19 + $0x10] sm:$0xff]  }
 0x4f1   : > { %2362 = vmatprep.mubr.msk.bf16.mxu0 %vm2614_vm2, %v2613_v43  ;;  %2355 = vmatpush3.bf16.msra.mxu0 %v2501_v42  ;;  %v2512_v14 = vld [vmem:[%s2769_s19 + $0x18] sm:$0xff]  }
 0x4f2   : > { %2356 = vmatprep.subr.bf16.mxu0 %v2613_v43 }
 0x4f5   : > { %2357 = vmatpush3.bf16.msra.mxu0 %v2502_v44 }
 0x4f6   : > { %2358 = vmatprep.subr.bf16.mxu0 %v2613_v43 }
 0x4f9   : > { %2359 = vmatpush3.bf16.msra.mxu0 %v2503_v45 }
 0x4fa   : > { %2360 = vmatprep.subr.bf16.mxu0 %v2613_v43 }
 0x4fd   : > { %2361 = vmatpush3.bf16.msra.mxu0 %v2504_v53 }
 0x4fe   : > { %2366 = vmatprep.subr.bf16.mxu0 %v2613_v43 }
 0x5c3   : > { %v1273_v20 = vpop.f32.mrb[36].mxu0 }
 0x5c4   : > { %v1274_v21 = vadd.f32 %v1273_v20, %v1211_v19  ;;  %v2332_v22 = vpop.f32.mrb[37].mxu0  ;;  %v2519_v20 = vld [vmem:[%s2751_s23 + $0x38] sm:$0xff]  }
 0x5c5   : > { %v1276_v23 = vpop.f32.mrb[38].mxu0 }
 0x5c6   : > { %2097 = vst [vmem:[%s2933_s17 + $0x20] sm:$0xff] %v1274_v21  ;;  %v1277_v24 = vadd.f32 %v1276_v23, %v1211_v19  ;;  %1280 = vmax.xlane.f32.xlu0 %v1274_v21  ;;  %v2333_v25 = vpop.f32.mrb[39].mxu0  ;;  %v2518_v19 = vld [vmem:[%s2769_s19 + $0x30] sm:$0xff]  }
 0x5c8   : > { %2098 = vst [vmem:[%s2933_s17 + $0x28] sm:$0xff] %v1277_v24  ;;  %1282 = vmax.xlane.f32.xlu1 %v1277_v24 }
 0x653   : > { %v1281_v30 = vpop.xlane.xlu0 %1280 }
 0x654   : > { %v1284_v31 = vsub.f32 %v1274_v21, %v1281_v30  ;;  %v2520_v21 = vld [vmem:[%s2769_s19 + $0x38] sm:$0xff]   ;;  %v2522_v30 = vld [vmem:[%s2751_s23 + $0x8] sm:$0xff]  }
 0x655   : > { %v1283_v32 = vpop.xlane.xlu1 %1282 }
 0x656   : > { %v1286_v33 = vmul.f32 1.442695, %v1284_v31  ;;  %v1285_v34 = vsub.f32 %v1277_v24, %v1283_v32  ;;  %v2523_v31 = vld [vmem:[%s2751_s23 + $0x10] sm:$0xff]   ;;  %v2524_v32 = vld [vmem:[%s2751_s23 + $0x18] sm:$0xff]   ;;  %s2425_s23 = smul.u32 768, %s2685_s9  ;;  %s3035_s9 = scalar_lea.sflag [#allocation3], %s397_s12 }
 0x658   : > { %2533 = vpow2.f32 %v1286_v33  ;;  %v1288_v35 = vmul.f32 1.442695, %v1285_v34  ;;  %v1547_v33 = vsub.s32 1, %v2919_v16  ;;  %v1641_v34 = vsub.s32 3, %v2919_v16  ;;  %s3030_s20 = scalar_lea.hbm %s3084_s8, %s2425_s23 }
 0x65a   : > { %2535 = vpow2.f32 %v1288_v35  ;;  %v1548_v35 = vrot.slane %v2928_v18, %v1547_v33 }
 0x662   : > { %v2534_v36 = vpop.eup %2533 }
 0x663   : > { %1290 = vadd.xlane.f32.xlu0 %v2534_v36 }
 0x664   : > { %v2536_v37 = vpop.eup %2535 }
 0x665   : > { %1292 = vadd.xlane.f32.xlu1 %v2536_v37 }
 0x679   : > { %1618 = vrot.lane.b32.xlu0 %v1182_v11, %s2615_s18 }
 0x6f0   : > { %v1291_v46 = vpop.xlane.xlu0 %1290 }
 0x6f1   : > { %2537 = vrcp.f32 %v1291_v46 }
 0x6f2   : > { %v1293_v47 = vpop.xlane.xlu1 %1292 }
 0x6f3   : > { %2539 = vrcp.f32 %v1293_v47 }
 0x6f4   : > { %v1619_v27 = vpop.permute.xlu0 %1618 }
 0x6fb   : > { %v2538_v48 = vpop.eup %2537 }
 0x6fc   : > { %v1296_v50 = vmul.f32 %v2538_v48, %v2534_v36  ;;  %v1642_v36 = vrot.slane %v2928_v18, %v1641_v34 }
 0x6fd   : > { %v2540_v49 = vpop.eup %2539 }
 0x6fe   : > { %v1297_v51 = vmul.f32 %v2540_v49, %v2536_v37 }
 0x700   : > { %v1298_v52 = vpack.c.bf16 %v1297_v51, %v1296_v50 }
 0x702   : > { %2351 = vmatmul.mubr.bf16.vlgmr.msra.gmra.mrb[28].mxu1 %v1298_v52 }
 0x703   : > { %2386 = vmatprep.mubr.msk.bf16.mxu1 %vm2614_vm2, %v2613_v43  ;;  %2379 = vmatpush3.bf16.msra.mxu1 %v2513_v63 }
 0x704   : > { %2380 = vmatprep.subr.bf16.mxu1 %v2613_v43 }
 0x707   : > { %2381 = vmatpush3.bf16.msra.mxu1 %v2515_v0 }
 0x708   : > { %2382 = vmatprep.subr.bf16.mxu1 %v2613_v43 }
 0x70b   : > { %2383 = vmatpush3.bf16.msra.mxu1 %v2517_v1 }
 0x70c   : > { %2384 = vmatprep.subr.bf16.mxu1 %v2613_v43 }
 0x70f   : > { %2385 = vmatpush3.bf16.msra.mxu1 %v2519_v20 }
 0x710   : > { %2410 = vmatprep.subr.bf16.mxu1 %v2613_v43 }
 0x7d5   : > { %v1397_v54 = vpop.f32.mrb[28].mxu1 }
 0x7d6   : > { %v2352_v55 = vpop.f32.mrb[29].mxu1 }
 0x7d7   : > { %v1400_v56 = vpop.f32.mrb[30].mxu1 }
 0x7d8   : > { %v1404_v58 = vpack.c.bf16 %v1400_v56, %v1397_v54  ;;  %v2353_v59 = vpop.f32.mrb[31].mxu1 }
 0x7da   : > { %2363 = vmatmul.mubr.msk.bf16.vlgmr.msra.gmra.mrb[40].mxu0 %vm705_vm1, %v1404_v58 }
 0x7db   : > { %2367 = vmatpush3.bf16.msra.mxu0 %v2505_v57  ;;  %2374 = vmatprep.mubr.msk.bf16.mxu0 %vm2614_vm2, %v2613_v43 }
 0x7dc   : > { %2368 = vmatprep.subr.bf16.mxu0 %v2613_v43 }
 0x7df   : > { %2369 = vmatpush3.bf16.msra.mxu0 %v2506_v60 }
 0x7e0   : > { %2370 = vmatprep.subr.bf16.mxu0 %v2613_v43 }
 0x7e3   : > { %2371 = vmatpush3.bf16.msra.mxu0 %v2507_v61 }
 0x7e4   : > { %2372 = vmatprep.subr.bf16.mxu0 %v2613_v43 }
 0x7e7   : > { %2373 = vmatpush3.bf16.msra.mxu0 %v2508_v62 }
 0x7e8   : > { %2390 = vmatprep.subr.bf16.mxu0 %v2613_v43 }
 0x8ad   : > { %v1466_v2 = vpop.f32.mrb[40].mxu0 }
 0x8ae   : > { %v2364_v3 = vpop.f32.mrb[41].mxu0  ;;  %v1473_v5 = vmax.f32 %v1466_v2, 0.0 }
 0x8af   : > { %v1469_v4 = vpop.f32.mrb[42].mxu0 }
 0x8b0   : > { %v1474_v7 = vmax.f32 %v1469_v4, 0.0  ;;  %v2365_v8 = vpop.f32.mrb[43].mxu0  ;;  %v1753_v4 = vsub.s32 0, %v2919_v16 }
 0x8b2   : > { %v1475_v11 = vpack.c.bf16 %v1474_v7, %v1473_v5  ;;  %v1754_v5 = vrot.slane %v2928_v18, %v1753_v4 }
 0x8b4   : > { %2375 = vmatmul.mubr.msk.bf16.vlgmr.msra.gmra.mrb[44].mxu0 %vm705_vm1, %v1475_v11 }
 0x8b5   : > { %2391 = vmatpush3.bf16.msra.mxu0 %v2509_v9  ;;  %2406 = vmatprep.mubr.msk.bf16.mxu0 %vm2614_vm2, %v2613_v43 }
 0x8b6   : > { %2392 = vmatprep.subr.bf16.mxu0 %v2613_v43 }
 0x8b9   : > { %2393 = vmatpush3.bf16.msra.mxu0 %v2510_v12 }
 0x8ba   : > { %2394 = vmatprep.subr.bf16.mxu0 %v2613_v43 }
 0x8bd   : > { %2395 = vmatpush3.bf16.msra.mxu0 %v2511_v13 }
 0x8be   : > { %2396 = vmatprep.subr.bf16.mxu0 %v2613_v43 }
 0x8c1   : > { %2397 = vmatpush3.bf16.msra.mxu0 %v2512_v14 }
 0x8c2   : > { %2398 = vmatprep.subr.bf16.mxu0 %v2613_v43 }
 0x8c5   : > { %2399 = vmatpush3.bf16.msra.mxu0 %v2514_v15 }
 0x8c6   : > { %2400 = vmatprep.subr.bf16.mxu0 %v2613_v43 }
 0x8c9   : > { %2401 = vmatpush3.bf16.msra.mxu0 %v2516_v17 }
 0x8ca   : > { %2402 = vmatprep.subr.bf16.mxu0 %v2613_v43 }
 0x8cd   : > { %2403 = vmatpush3.bf16.msra.mxu0 %v2518_v19 }
 0x8ce   : > { %2404 = vmatprep.subr.bf16.mxu0 %v2613_v43 }
 0x8d1   : > { %2405 = vmatpush3.bf16.msra.mxu0 %v2520_v21 }
 0x987   : > { %v1537_v22 = vpop.f32.mrb[44].mxu0 }
 0x988   : > { %v2376_v23 = vpop.f32.mrb[45].mxu0 }
 0x989   : > { %v1540_v24 = vpop.f32.mrb[46].mxu0 }
 0x98a   : > { %v1544_v25 = vpack.c.bf16 %v1540_v24, %v1537_v22  ;;  %v2377_v26 = vpop.f32.mrb[47].mxu0 }
 0x98c   : > { %2387 = vmatmul.mubr.msk.bf16.vlgmr.msra.gmra.mrb[32].mxu1 %vm705_vm1, %v1544_v25  ;;  %v1621_v28 = vsel %vm705_vm1, %v1544_v25, %v1619_v27 }
 0x98d   : > { %2407 = vmatmul.mubr.bf16.vlgmr.msra.gmra.mrb[48].mxu0 %v1621_v28  ;;  %2418 = vmatprep.mubr.msk.bf16.mxu1 %vm2614_vm2, %v2613_v43 }
 0x98e   : > { %2411 = vmatpush3.bf16.msra.mxu1 %v2521_v29 }
 0x98f   : > { %2412 = vmatprep.subr.bf16.mxu1 %v2613_v43 }
 0x992   : > { %2413 = vmatpush3.bf16.msra.mxu1 %v2522_v30 }
 0x993   : > { %2414 = vmatprep.subr.bf16.mxu1 %v2613_v43 }
 0x996   : > { %2415 = vmatpush3.bf16.msra.mxu1 %v2523_v31 }
 0x997   : > { %2416 = vmatprep.subr.bf16.mxu1 %v2613_v43 }
 0x99a   : > { %2417 = vmatpush3.bf16.msra.mxu1 %v2524_v32 }
 0xa5f   : > { %v1610_v37 = vpop.f32.mrb[32].mxu1 }
 0xa60   : > { %v1611_v38 = vadd.f32 %v1610_v37, %v1548_v35  ;;  %v2388_v39 = vpop.f32.mrb[33].mxu1  ;;  %v1725_v40 = vpop.f32.mrb[48].mxu0 }
 0xa61   : > { %v1726_v41 = vadd.f32 %v1725_v40, %v1642_v36  ;;  %v1613_v42 = vpop.f32.mrb[34].mxu1  ;;  %v2408_v44 = vpop.f32.mrb[49].mxu0 }
 0xa62   : > { %2095 = vst [vmem:[%s2933_s17 + $0x10] sm:$0xff] %v1611_v38  ;;  %v1614_v45 = vadd.f32 %v1613_v42, %v1548_v35  ;;  %v2389_v43 = vpop.f32.mrb[35].mxu1  ;;  %v1728_v46 = vpop.f32.mrb[50].mxu0 }
 0xa63   : > { %v1732_v47 = vsub.f32 0.0, %v1726_v41  ;;  %v1729_v48 = vadd.f32 %v1728_v46, %v1642_v36  ;;  %v2409_v49 = vpop.f32.mrb[51].mxu0 }
 0xa64   : > { %2096 = vst [vmem:[%s2933_s17 + $0x18] sm:$0xff] %v1614_v45 }
 0xa65   : > { %v1734_v50 = vmul.f32 1.442695, %v1732_v47  ;;  %v1733_v51 = vsub.f32 0.0, %v1729_v48 }
 0xa67   : > { %2541 = vpow2.f32 %v1734_v50  ;;  %v1736_v52 = vmul.f32 1.442695, %v1733_v51 }
 0xa69   : > { %2543 = vpow2.f32 %v1736_v52 }
 0xa71   : > { %v2542_v53 = vpop.eup %2541 }
 0xa72   : > { %v1738_v54 = vadd.f32 1.0, %v2542_v53 }
 0xa73   : > { %v2544_v55 = vpop.eup %2543 }
 0xa74   : > { %2545 = vrcp.f32 %v1738_v54  ;;  %v1739_v56 = vadd.f32 1.0, %v2544_v55 }
 0xa76   : > { %2547 = vrcp.f32 %v1739_v56 }
 0xa7e   : > { %v2546_v57 = vpop.eup %2545 }
 0xa7f   : > { %v1744_v58 = vsub.f32 1.0, %v2546_v57  ;;  %v1742_v59 = vmul.f32 %v2546_v57, %v2910_v6 }
 0xa80   : > { %v2548_v60 = vpop.eup %2547 }
 0xa81   : > { %v1745_v61 = vsub.f32 1.0, %v2548_v60  ;;  %v1743_v62 = vmul.f32 %v2548_v60, %v2912_v10  ;;  %v1746_v63 = vmul.f32 %v1744_v58, %v1537_v22 }
 0xa83   : > { %v1747_v0 = vmul.f32 %v1745_v61, %v1540_v24  ;;  %v1748_v1 = vadd.f32 %v1746_v63, %v1742_v59 }
 0xa85   : > { %v1749_v2 = vadd.f32 %v1747_v0, %v1743_v62 }
 0xa87   : > { %v1750_v3 = vpack.c.bf16 %v1749_v2, %v1748_v1 }
 0xa89   : > { %2419 = vmatmul.mubr.msk.bf16.vlgmr.msra.gmra.mrb[36].mxu1 %vm705_vm1, %v1750_v3 }
 0xb5c   : > { %v1816_v6 = vpop.f32.mrb[36].mxu1 }
 0xb5d   : > { %v1817_v7 = vadd.f32 %v1816_v6, %v1754_v5  ;;  %v2420_v10 = vpop.f32.mrb[37].mxu1 }
 0xb5e   : > { %v1819_v8 = vpop.f32.mrb[38].mxu1 }
 0xb5f   : > { %1823 = vst [vmem:[%s2933_s17] sm:$0xff] %v1817_v7  ;;  %v1820_v9 = vadd.f32 %v1819_v8, %v1754_v5  ;;  %v2421_v11 = vpop.f32.mrb[39].mxu1 }
 0xb61   : > { %1824 = vst [vmem:[%s2933_s17 + $0x8] sm:$0xff] %v1820_v9 }
 0xb62   : > { %2562 = shalt.err (!%p2559_p3)
}
 0xb63   : > { %s2563_s12 = scalar_lea.hbm %s3030_s20, 768  ;;  %s2567_s18 = scalar_lea.hbm %s3084_s8, 1536 }
 0xb64   : > { %p2564_p4 = scmp.ne.s32.totalorder %s3030_s20, %s2563_s12  ;;  %p2568_p9 = scmp.lt.u32.totalorder %s3030_s20, %s3084_s8 }
 0xb65   : > { %p2569_p10 = scmp.lt.u32.totalorder %s2567_s18, %s2563_s12  ;;  %p2571_p12 = scmp.lt.u32.totalorder %s2563_s12, %s3030_s20 }
 0xb66   : > { %p2565_p7 = pnand %p2564_p4, %p2702_p5 }
 0xb67   : > { %p2570_p11 = por %p2569_p10, %p2568_p9 }
 0xb68   : > { %p2566_p8 = pneg %p2565_p7 }
 0xb69   : > { %p2572_p13 = por %p2571_p12, %p2570_p11 }
 0xb6b   : > { %p2573_p0 = pnand %p2572_p13, %p2566_p8 }
 0xb6d   : > { %2576 = shalt.err (!%p2573_p0)
}
 0xb6e   : > { %s2617_s19 = smov 128   ;;  %s2618_s21 = smov 8  }
 0xb6f   : > { %2426 = dma.vmem_to_hbm [thread:$0]  (%p2702_p5), %s3024_s13, 768, %s3030_s20, %s3035_s9, %s2617_s19, %s2617_s19, %s2618_s21  }
 0xb70 PF: > { %p2432_p1 = scmp.ge.s32.totalorder %s2611_s30, 2  ;;  %s1860_s24 = sand.u32 1, %s2599_s27  }
 0xb71   : > { %s1861_s25 = scalar_lea.sflag [#allocation3], %s1860_s24 }
 0xb72   : > { %p2429_p2 = pnand %p2432_p1, %p2706_p6 }
 0xb74   : > { %2594 = dma.done.wait (!%p2429_p2), %s1861_s25, 768  }
 0xb75   : > { %2596 = vsyncadd (!%p2429_p2), %s1861_s25, 4294966528  ;;  %p18_p3 = scmp.ge.s32.totalorder %s2689_s11, 4   ;;  %s3087_s27 = smov %s2603_s28 }
 0xb76   : > { %s3088_s28 = smov %s2607_s29  ;;  %s3089_s29 = smov %s2700_s14 }
 0xb77   : > { %s3090_s30 = smov %s2689_s11  ;;  %20 = sbr.rel (!%p18_p3) target bundleno = 3 (0x3), region = 110 }
 0xb7e   :  { %1866 = vsyncpa [#allocation3], 1 }
 0xb7f   :  { %1868 = vsyncpa [#allocation3 + $0x1], 1 }

</bundles_post_ra>
